<compile_context>
chip_gen: v7x
topology: tpu7x:2x2x1
jax: 0.10.0
libtpu: 0.0.40
codegen_flags: <defaults>
</compile_context>

<pallas_src>
import functools

import jax
import jax.numpy as jnp
import numpy as np
from jax.experimental import pallas as pl
from jax.experimental.pallas import tpu as pltpu

LANE = 128       # vreg lane width; last dim of every block
TR_MAX = 1024    # max block rows per grid step (512 KiB f32 + 128 KiB int8 per block)
NCORES = 2       # parallel leading grid axis; uses both TCs on v7x, harmless on v5e/v6e
_PAD_CODE = 127  # bucket code that never matches a real (label, group) bucket


def _mean_loss_kernel(x_ref, code_ref, acc_ref, *, tr):
    """Accumulate per-bucket partial sums / counts of logsigmoid(x).

    acc_ref block: (1, 8, 8, LANE) f32, resident in VMEM across the reduction axis j:
      plane k   (k=0..3): sum(logsigmoid(x) | bucket == k)
      plane 4+k         : count(bucket == k)
    """
    j = pl.program_id(1)

    @pl.when(j == 0)
    def _():
        acc_ref[...] = jnp.zeros_like(acc_ref)

    x = x_ref[...]                            # (tr, LANE) f32
    code = code_ref[...].astype(jnp.int32)    # unpack int8 once; 4 cheap compares below

    # numerically-stable log-sigmoid: min(x, 0) - log1p(exp(-|x|))
    ls = jnp.minimum(x, 0.0) - jnp.log1p(jnp.exp(-jnp.abs(x)))

    one = jnp.ones_like(ls)   # hoisted broadcasts (JAX does not CSE broadcast_in_dim)
    zero = jnp.zeros_like(ls)
    for k in range(4):
        m = code == k
        s = jnp.where(m, ls, zero).reshape(tr // 8, 8, LANE).sum(axis=0)   # (8, LANE)
        c = jnp.where(m, one, zero).reshape(tr // 8, 8, LANE).sum(axis=0)  # (8, LANE)
        acc_ref[0, k] = acc_ref[0, k] + s
        acc_ref[0, 4 + k] = acc_ref[0, 4 + k] + c


def mean_loss(outputs, labels, group, fair_criteria="EqOdd", *, tr_max=TR_MAX):
    assert fair_criteria in ("EqOdd", "EqOpp")
    label_list = (0, 1) if fair_criteria == "EqOdd" else (0,)

    n = outputs.shape[0]
    x = outputs if outputs.dtype == jnp.float32 else outputs.astype(jnp.float32)
    lab = labels.astype(jnp.int32)
    grp = group.astype(jnp.int32)

    # Pack (label, group) into one int8 bucket code (fused by XLA into a single pass).
    gbit = jnp.where(grp == -1, 0, jnp.where(grp == 1, 1, 100))          # invalid group -> no bucket
    code = jnp.where((lab == 0) | (lab == 1), 2 * lab + gbit, _PAD_CODE).astype(jnp.int8)

    # Block rows: as large as possible, but no bigger than needed for small inputs.
    # Multiple of 32 keeps int8 (32,128) tiling aligned.
    rows_needed = -(-n // LANE)
    tr = min(tr_max, ((-(-rows_needed // NCORES) + 31) // 32) * 32)
    tr = max(tr, 32)

    # TODO(synk): the pad/reshape of x still materializes one HBM copy; avoiding it entirely
    # would need 1-D block specs + in-kernel ragged masking, which is riskier to lower.
    chunk = NCORES * tr * LANE
    n_pad = -(-n // chunk) * chunk
    pad = n_pad - n
    x = jnp.pad(x, (0, pad))                                    # padded ls is finite, never selected
    code = jnp.pad(code, (0, pad), constant_values=_PAD_CODE)   # padding never matches a bucket

    rows = n_pad // LANE
    x2 = x.reshape(rows, LANE)
    c2 = code.reshape(rows, LANE)
    nsteps = rows // (NCORES * tr)

    kernel = functools.partial(_mean_loss_kernel, tr=tr)
    acc = pl.pallas_call(
        kernel,
        out_shape=jax.ShapeDtypeStruct((NCORES, 8, 8, LANE), jnp.float32),
        grid_spec=pltpu.PrefetchScalarGridSpec(
            num_scalar_prefetch=0,
            grid=(NCORES, nsteps),
            in_specs=[
                pl.BlockSpec((tr, LANE), lambda c, j: (c * nsteps + j, 0)),
                pl.BlockSpec((tr, LANE), lambda c, j: (c * nsteps + j, 0)),
            ],
            # Output block index ignores j -> block stays resident in VMEM and acts as the
            # accumulator across the reduction axis; one distinct block per core (no races).
            out_specs=pl.BlockSpec((1, 8, 8, LANE), lambda c, j: (c, 0, 0, 0)),
        ),
        compiler_params=pltpu.CompilerParams(
            dimension_semantics=("parallel", "arbitrary")),
    )(x2, c2)

    # Tiny finalize in plain JAX: fold per-core / per-lane partials, then the mean-gap terms.
    totals = jnp.sum(acc, axis=(0, 2, 3))   # (8,) = [s0-, s0+, s1-, s1+, c0-, c0+, c1-, c1+]
    result = jnp.float32(0.0)
    for l in label_list:
        s_neg, s_pos = totals[2 * l + 0], totals[2 * l + 1]
        c_neg, c_pos = totals[4 + 2 * l + 0], totals[4 + 2 * l + 1]
        gap = (s_neg / c_neg - s_pos / c_pos) ** 2
        # PyTorch skips the term entirely when there are no samples with this label.
        result = result + jnp.where(c_neg + c_pos > 0.0, gap, jnp.float32(0.0))
    return jnp.reshape(result, (1,))


def _reference(outputs, labels, group, fair_criteria):
    o = np.asarray(outputs, dtype=np.float64)
    lab = np.asarray(labels)
    grp = np.asarray(group)
    ls = np.minimum(o, 0.0) - np.log1p(np.exp(-np.abs(o)))
    label_list = [0, 1] if fair_criteria == "EqOdd" else [0]
    res = 0.0
    for l in label_list:
        m = lab == l
        if m.sum() > 0:
            oo, gg = ls[m], grp[m]
            res += (oo[gg == -1].mean() - oo[gg == 1].mean()) ** 2
    return np.float32(res)


if __name__ == "__main__":
    key = jax.random.PRNGKey(0)
    k1, k2, k3 = jax.random.split(key, 3)

    # Small case (non-multiple of any tile -> exercises padding / sentinel codes).
    N = 300
    outputs = jax.random.normal(k1, (N,), dtype=jnp.float32) * 2.0
    labels = jax.random.bernoulli(k2, 0.5, (N,)).astype(jnp.int32)
    group = jnp.where(jax.random.bernoulli(k3, 0.5, (N,)), 1, -1).astype(jnp.int32)

    for crit in ("EqOdd", "EqOpp"):
        res = jax.block_until_ready(mean_loss(outputs, labels, group, fair_criteria=crit))
        ref = _reference(outputs, labels, group, crit)
        assert res.shape == (1,)
        assert np.allclose(np.asarray(res)[0], ref, rtol=1e-4, atol=1e-6), (crit, res, ref)

    # Larger case with a small tr_max to exercise multi-step accumulation and both grid axes.
    N2 = 30000
    o2 = jax.random.normal(k1, (N2,), dtype=jnp.float32) * 2.0
    l2 = jax.random.bernoulli(k2, 0.5, (N2,)).astype(jnp.int32)
    g2 = jnp.where(jax.random.bernoulli(k3, 0.5, (N2,)), 1, -1).astype(jnp.int32)
    res2 = jax.block_until_ready(mean_loss(o2, l2, g2, "EqOdd", tr_max=32))
    ref2 = _reference(o2, l2, g2, "EqOdd")
    assert np.allclose(np.asarray(res2)[0], ref2, rtol=2e-3, atol=1e-7), (res2, ref2)

    print("KERNEL_OK")
</pallas_src>

<mosaic_0001>
module attributes {stable_mosaic.version = 11 : i64} {
  func.func @_mean_loss_kernel(%arg0: i32, %arg1: i32, %arg2: memref<32x128xf32, #tpu.memory_space<vmem>>, %arg3: memref<32x128xi8, #tpu.memory_space<vmem>>, %arg4: memref<1x8x8x128xf32, #tpu.memory_space<vmem>>) attributes {dimension_semantics = [#tpu.dimension_semantics<parallel>, #tpu.dimension_semantics<arbitrary>], iteration_bounds = array<i64: 2, 1>, scalar_prefetch = 0 : i64, scratch_operands = 0 : i64, tpu.core_type = #tpu.core_type<tc>, window_params = [{transform_indices = @transform_0, window_bounds = array<i64: 32, 128>}, {transform_indices = @transform_1, window_bounds = array<i64: 32, 128>}, {transform_indices = @transform_2, window_bounds = array<i64: 1, 8, 8, 128>}]} {
    %c0_i32 = arith.constant 0 : i32
    %0 = arith.cmpi eq, %arg1, %c0_i32 : i32
    %1 = arith.extui %0 : i1 to i32
    %c0_i32_0 = arith.constant 0 : i32
    %2 = arith.cmpi ne, %1, %c0_i32_0 : i32
    scf.if %2 {
      %cst_73 = arith.constant 0.000000e+00 : f32
      %96 = vector.broadcast %cst_73 : f32 to vector<1x8x8x128xf32>
      %c0_74 = arith.constant 0 : index
      %c0_75 = arith.constant 0 : index
      %c0_76 = arith.constant 0 : index
      %c0_77 = arith.constant 0 : index
      %97 = vector.load %arg4[%c0_74, %c0_75, %c0_76, %c0_77] : memref<1x8x8x128xf32, #tpu.memory_space<vmem>>, vector<1x8x8x128xf32>
      tpu.vector_store %arg4[%c0_74, %c0_75, %c0_76, %c0_77], %96 {strides = array<i32>} : memref<1x8x8x128xf32, #tpu.memory_space<vmem>>, vector<1x8x8x128xf32>,
    } else {
    }
    %c0 = arith.constant 0 : index
    %c0_1 = arith.constant 0 : index
    %3 = vector.load %arg2[%c0, %c0_1] : memref<32x128xf32, #tpu.memory_space<vmem>>, vector<32x128xf32>
    %c0_2 = arith.constant 0 : index
    %c0_3 = arith.constant 0 : index
    %4 = vector.load %arg3[%c0_2, %c0_3] : memref<32x128xi8, #tpu.memory_space<vmem>>, vector<32x128xi8>
    %5 = arith.extsi %4 : vector<32x128xi8> to vector<32x128xi32>
    %cst = arith.constant 0.000000e+00 : f32
    %6 = vector.broadcast %cst : f32 to vector<32x128xf32>
    %7 = arith.minimumf %3, %6 : vector<32x128xf32>
    %8 = math.absf %3 : vector<32x128xf32>
    %cst_4 = arith.constant 0.000000e+00 : f32
    %9 = vector.broadcast %cst_4 : f32 to vector<32x128xf32>
    %10 = arith.subf %9, %8 : vector<32x128xf32>
    %11 = math.exp %10 : vector<32x128xf32>
    %12 = math.log1p %11 : vector<32x128xf32>
    %13 = arith.subf %7, %12 : vector<32x128xf32>
    %cst_5 = arith.constant 1.000000e+00 : f32
    %14 = vector.broadcast %cst_5 : f32 to vector<32x128xf32>
    %cst_6 = arith.constant 0.000000e+00 : f32
    %15 = vector.broadcast %cst_6 : f32 to vector<32x128xf32>
    %c0_i32_7 = arith.constant 0 : i32
    %16 = vector.broadcast %c0_i32_7 : i32 to vector<32x128xi32>
    %17 = arith.cmpi eq, %5, %16 : vector<32x128xi32>
    %18 = arith.select %17, %13, %15 : vector<32x128xi1>, vector<32x128xf32>
    %19 = vector.shape_cast %18 : vector<32x128xf32> to vector<4x8x128xf32>
    %cst_8 = arith.constant dense<0.000000e+00> : vector<8x128xf32>
    %20 = vector.multi_reduction <add>, %19, %cst_8 [0] : vector<4x8x128xf32> to vector<8x128xf32>
    %21 = arith.select %17, %14, %15 : vector<32x128xi1>, vector<32x128xf32>
    %22 = vector.shape_cast %21 : vector<32x128xf32> to vector<4x8x128xf32>
    %cst_9 = arith.constant dense<0.000000e+00> : vector<8x128xf32>
    %23 = vector.multi_reduction <add>, %22, %cst_9 [0] : vector<4x8x128xf32> to vector<8x128xf32>
    %c0_10 = arith.constant 0 : index
    %c0_11 = arith.constant 0 : index
    %c0_12 = arith.constant 0 : index
    %c0_13 = arith.constant 0 : index
    %24 = vector.load %arg4[%c0_10, %c0_11, %c0_12, %c0_13] : memref<1x8x8x128xf32, #tpu.memory_space<vmem>>, vector<1x1x8x128xf32>
    %25 = vector.shape_cast %24 : vector<1x1x8x128xf32> to vector<8x128xf32>
    %26 = arith.addf %25, %20 : vector<8x128xf32>
    %c0_14 = arith.constant 0 : index
    %c0_15 = arith.constant 0 : index
    %c0_16 = arith.constant 0 : index
    %c0_17 = arith.constant 0 : index
    %27 = vector.load %arg4[%c0_14, %c0_15, %c0_16, %c0_17] : memref<1x8x8x128xf32, #tpu.memory_space<vmem>>, vector<1x1x8x128xf32>
    %28 = vector.shape_cast %27 : vector<1x1x8x128xf32> to vector<8x128xf32>
    %29 = vector.shape_cast %26 : vector<8x128xf32> to vector<1x1x8x128xf32>
    tpu.vector_store %arg4[%c0_14, %c0_15, %c0_16, %c0_17], %29 {strides = array<i32>} : memref<1x8x8x128xf32, #tpu.memory_space<vmem>>, vector<1x1x8x128xf32>,
    %c0_18 = arith.constant 0 : index
    %c4 = arith.constant 4 : index
    %c0_19 = arith.constant 0 : index
    %c0_20 = arith.constant 0 : index
    %30 = vector.load %arg4[%c0_18, %c4, %c0_19, %c0_20] : memref<1x8x8x128xf32, #tpu.memory_space<vmem>>, vector<1x1x8x128xf32>
    %31 = vector.shape_cast %30 : vector<1x1x8x128xf32> to vector<8x128xf32>
    %32 = arith.addf %31, %23 : vector<8x128xf32>
    %c0_21 = arith.constant 0 : index
    %c4_22 = arith.constant 4 : index
    %c0_23 = arith.constant 0 : index
    %c0_24 = arith.constant 0 : index
    %33 = vector.load %arg4[%c0_21, %c4_22, %c0_23, %c0_24] : memref<1x8x8x128xf32, #tpu.memory_space<vmem>>, vector<1x1x8x128xf32>
    %34 = vector.shape_cast %33 : vector<1x1x8x128xf32> to vector<8x128xf32>
    %35 = vector.shape_cast %32 : vector<8x128xf32> to vector<1x1x8x128xf32>
    tpu.vector_store %arg4[%c0_21, %c4_22, %c0_23, %c0_24], %35 {strides = array<i32>} : memref<1x8x8x128xf32, #tpu.memory_space<vmem>>, vector<1x1x8x128xf32>,
    %c1_i32 = arith.constant 1 : i32
    %36 = vector.broadcast %c1_i32 : i32 to vector<32x128xi32>
    %37 = arith.cmpi eq, %5, %36 : vector<32x128xi32>
    %38 = arith.select %37, %13, %15 : vector<32x128xi1>, vector<32x128xf32>
    %39 = vector.shape_cast %38 : vector<32x128xf32> to vector<4x8x128xf32>
    %cst_25 = arith.constant dense<0.000000e+00> : vector<8x128xf32>
    %40 = vector.multi_reduction <add>, %39, %cst_25 [0] : vector<4x8x128xf32> to vector<8x128xf32>
    %41 = arith.select %37, %14, %15 : vector<32x128xi1>, vector<32x128xf32>
    %42 = vector.shape_cast %41 : vector<32x128xf32> to vector<4x8x128xf32>
    %cst_26 = arith.constant dense<0.000000e+00> : vector<8x128xf32>
    %43 = vector.multi_reduction <add>, %42, %cst_26 [0] : vector<4x8x128xf32> to vector<8x128xf32>
    %c0_27 = arith.constant 0 : index
    %c1 = arith.constant 1 : index
    %c0_28 = arith.constant 0 : index
    %c0_29 = arith.constant 0 : index
    %44 = vector.load %arg4[%c0_27, %c1, %c0_28, %c0_29] : memref<1x8x8x128xf32, #tpu.memory_space<vmem>>, vector<1x1x8x128xf32>
    %45 = vector.shape_cast %44 : vector<1x1x8x128xf32> to vector<8x128xf32>
    %46 = arith.addf %45, %40 : vector<8x128xf32>
    %c0_30 = arith.constant 0 : index
    %c1_31 = arith.constant 1 : index
    %c0_32 = arith.constant 0 : index
    %c0_33 = arith.constant 0 : index
    %47 = vector.load %arg4[%c0_30, %c1_31, %c0_32, %c0_33] : memref<1x8x8x128xf32, #tpu.memory_space<vmem>>, vector<1x1x8x128xf32>
    %48 = vector.shape_cast %47 : vector<1x1x8x128xf32> to vector<8x128xf32>
    %49 = vector.shape_cast %46 : vector<8x128xf32> to vector<1x1x8x128xf32>
    tpu.vector_store %arg4[%c0_30, %c1_31, %c0_32, %c0_33], %49 {strides = array<i32>} : memref<1x8x8x128xf32, #tpu.memory_space<vmem>>, vector<1x1x8x128xf32>,
    %c0_34 = arith.constant 0 : index
    %c5 = arith.constant 5 : index
    %c0_35 = arith.constant 0 : index
    %c0_36 = arith.constant 0 : index
    %50 = vector.load %arg4[%c0_34, %c5, %c0_35, %c0_36] : memref<1x8x8x128xf32, #tpu.memory_space<vmem>>, vector<1x1x8x128xf32>
    %51 = vector.shape_cast %50 : vector<1x1x8x128xf32> to vector<8x128xf32>
    %52 = arith.addf %51, %43 : vector<8x128xf32>
    %c0_37 = arith.constant 0 : index
    %c5_38 = arith.constant 5 : index
    %c0_39 = arith.constant 0 : index
    %c0_40 = arith.constant 0 : index
    %53 = vector.load %arg4[%c0_37, %c5_38, %c0_39, %c0_40] : memref<1x8x8x128xf32, #tpu.memory_space<vmem>>, vector<1x1x8x128xf32>
    %54 = vector.shape_cast %53 : vector<1x1x8x128xf32> to vector<8x128xf32>
    %55 = vector.shape_cast %52 : vector<8x128xf32> to vector<1x1x8x128xf32>
    tpu.vector_store %arg4[%c0_37, %c5_38, %c0_39, %c0_40], %55 {strides = array<i32>} : memref<1x8x8x128xf32, #tpu.memory_space<vmem>>, vector<1x1x8x128xf32>,
    %c2_i32 = arith.constant 2 : i32
    %56 = vector.broadcast %c2_i32 : i32 to vector<32x128xi32>
    %57 = arith.cmpi eq, %5, %56 : vector<32x128xi32>
    %58 = arith.select %57, %13, %15 : vector<32x128xi1>, vector<32x128xf32>
    %59 = vector.shape_cast %58 : vector<32x128xf32> to vector<4x8x128xf32>
    %cst_41 = arith.constant dense<0.000000e+00> : vector<8x128xf32>
    %60 = vector.multi_reduction <add>, %59, %cst_41 [0] : vector<4x8x128xf32> to vector<8x128xf32>
    %61 = arith.select %57, %14, %15 : vector<32x128xi1>, vector<32x128xf32>
    %62 = vector.shape_cast %61 : vector<32x128xf32> to vector<4x8x128xf32>
    %cst_42 = arith.constant dense<0.000000e+00> : vector<8x128xf32>
    %63 = vector.multi_reduction <add>, %62, %cst_42 [0] : vector<4x8x128xf32> to vector<8x128xf32>
    %c0_43 = arith.constant 0 : index
    %c2 = arith.constant 2 : index
    %c0_44 = arith.constant 0 : index
    %c0_45 = arith.constant 0 : index
    %64 = vector.load %arg4[%c0_43, %c2, %c0_44, %c0_45] : memref<1x8x8x128xf32, #tpu.memory_space<vmem>>, vector<1x1x8x128xf32>
    %65 = vector.shape_cast %64 : vector<1x1x8x128xf32> to vector<8x128xf32>
    %66 = arith.addf %65, %60 : vector<8x128xf32>
    %c0_46 = arith.constant 0 : index
    %c2_47 = arith.constant 2 : index
    %c0_48 = arith.constant 0 : index
    %c0_49 = arith.constant 0 : index
    %67 = vector.load %arg4[%c0_46, %c2_47, %c0_48, %c0_49] : memref<1x8x8x128xf32, #tpu.memory_space<vmem>>, vector<1x1x8x128xf32>
    %68 = vector.shape_cast %67 : vector<1x1x8x128xf32> to vector<8x128xf32>
    %69 = vector.shape_cast %66 : vector<8x128xf32> to vector<1x1x8x128xf32>
    tpu.vector_store %arg4[%c0_46, %c2_47, %c0_48, %c0_49], %69 {strides = array<i32>} : memref<1x8x8x128xf32, #tpu.memory_space<vmem>>, vector<1x1x8x128xf32>,
    %c0_50 = arith.constant 0 : index
    %c6 = arith.constant 6 : index
    %c0_51 = arith.constant 0 : index
    %c0_52 = arith.constant 0 : index
    %70 = vector.load %arg4[%c0_50, %c6, %c0_51, %c0_52] : memref<1x8x8x128xf32, #tpu.memory_space<vmem>>, vector<1x1x8x128xf32>
    %71 = vector.shape_cast %70 : vector<1x1x8x128xf32> to vector<8x128xf32>
    %72 = arith.addf %71, %63 : vector<8x128xf32>
    %c0_53 = arith.constant 0 : index
    %c6_54 = arith.constant 6 : index
    %c0_55 = arith.constant 0 : index
    %c0_56 = arith.constant 0 : index
    %73 = vector.load %arg4[%c0_53, %c6_54, %c0_55, %c0_56] : memref<1x8x8x128xf32, #tpu.memory_space<vmem>>, vector<1x1x8x128xf32>
    %74 = vector.shape_cast %73 : vector<1x1x8x128xf32> to vector<8x128xf32>
    %75 = vector.shape_cast %72 : vector<8x128xf32> to vector<1x1x8x128xf32>
    tpu.vector_store %arg4[%c0_53, %c6_54, %c0_55, %c0_56], %75 {strides = array<i32>} : memref<1x8x8x128xf32, #tpu.memory_space<vmem>>, vector<1x1x8x128xf32>,
    %c3_i32 = arith.constant 3 : i32
    %76 = vector.broadcast %c3_i32 : i32 to vector<32x128xi32>
    %77 = arith.cmpi eq, %5, %76 : vector<32x128xi32>
    %78 = arith.select %77, %13, %15 : vector<32x128xi1>, vector<32x128xf32>
    %79 = vector.shape_cast %78 : vector<32x128xf32> to vector<4x8x128xf32>
    %cst_57 = arith.constant dense<0.000000e+00> : vector<8x128xf32>
    %80 = vector.multi_reduction <add>, %79, %cst_57 [0] : vector<4x8x128xf32> to vector<8x128xf32>
    %81 = arith.select %77, %14, %15 : vector<32x128xi1>, vector<32x128xf32>
    %82 = vector.shape_cast %81 : vector<32x128xf32> to vector<4x8x128xf32>
    %cst_58 = arith.constant dense<0.000000e+00> : vector<8x128xf32>
    %83 = vector.multi_reduction <add>, %82, %cst_58 [0] : vector<4x8x128xf32> to vector<8x128xf32>
    %c0_59 = arith.constant 0 : index
    %c3 = arith.constant 3 : index
    %c0_60 = arith.constant 0 : index
    %c0_61 = arith.constant 0 : index
    %84 = vector.load %arg4[%c0_59, %c3, %c0_60, %c0_61] : memref<1x8x8x128xf32, #tpu.memory_space<vmem>>, vector<1x1x8x128xf32>
    %85 = vector.shape_cast %84 : vector<1x1x8x128xf32> to vector<8x128xf32>
    %86 = arith.addf %85, %80 : vector<8x128xf32>
    %c0_62 = arith.constant 0 : index
    %c3_63 = arith.constant 3 : index
    %c0_64 = arith.constant 0 : index
    %c0_65 = arith.constant 0 : index
    %87 = vector.load %arg4[%c0_62, %c3_63, %c0_64, %c0_65] : memref<1x8x8x128xf32, #tpu.memory_space<vmem>>, vector<1x1x8x128xf32>
    %88 = vector.shape_cast %87 : vector<1x1x8x128xf32> to vector<8x128xf32>
    %89 = vector.shape_cast %86 : vector<8x128xf32> to vector<1x1x8x128xf32>
    tpu.vector_store %arg4[%c0_62, %c3_63, %c0_64, %c0_65], %89 {strides = array<i32>} : memref<1x8x8x128xf32, #tpu.memory_space<vmem>>, vector<1x1x8x128xf32>,
    %c0_66 = arith.constant 0 : index
    %c7 = arith.constant 7 : index
    %c0_67 = arith.constant 0 : index
    %c0_68 = arith.constant 0 : index
    %90 = vector.load %arg4[%c0_66, %c7, %c0_67, %c0_68] : memref<1x8x8x128xf32, #tpu.memory_space<vmem>>, vector<1x1x8x128xf32>
    %91 = vector.shape_cast %90 : vector<1x1x8x128xf32> to vector<8x128xf32>
    %92 = arith.addf %91, %83 : vector<8x128xf32>
    %c0_69 = arith.constant 0 : index
    %c7_70 = arith.constant 7 : index
    %c0_71 = arith.constant 0 : index
    %c0_72 = arith.constant 0 : index
    %93 = vector.load %arg4[%c0_69, %c7_70, %c0_71, %c0_72] : memref<1x8x8x128xf32, #tpu.memory_space<vmem>>, vector<1x1x8x128xf32>
    %94 = vector.shape_cast %93 : vector<1x1x8x128xf32> to vector<8x128xf32>
    %95 = vector.shape_cast %92 : vector<8x128xf32> to vector<1x1x8x128xf32>
    tpu.vector_store %arg4[%c0_69, %c7_70, %c0_71, %c0_72], %95 {strides = array<i32>} : memref<1x8x8x128xf32, #tpu.memory_space<vmem>>, vector<1x1x8x128xf32>,
    return
  }
  func.func @transform_0(%arg0: i32, %arg1: i32) -> (i32, i32) {
    %c1_i32 = arith.constant 1 : i32
    %0 = arith.muli %arg0, %c1_i32 : i32
    %1 = arith.addi %0, %arg1 : i32
    %c0_i32 = arith.constant 0 : i32
    %c0_i32_0 = arith.constant 0 : i32
    return %1, %c0_i32 : i32, i32
  }
  func.func @transform_1(%arg0: i32, %arg1: i32) -> (i32, i32) {
    %c1_i32 = arith.constant 1 : i32
    %0 = arith.muli %arg0, %c1_i32 : i32
    %1 = arith.addi %0, %arg1 : i32
    %c0_i32 = arith.constant 0 : i32
    %c0_i32_0 = arith.constant 0 : i32
    return %1, %c0_i32 : i32, i32
  }
  func.func @transform_2(%arg0: i32, %arg1: i32) -> (i32, i32, i32, i32) {
    %c0_i32 = arith.constant 0 : i32
    %c0_i32_0 = arith.constant 0 : i32
    %c0_i32_1 = arith.constant 0 : i32
    %c0_i32_2 = arith.constant 0 : i32
    return %arg0, %c0_i32, %c0_i32_0, %c0_i32_1 : i32, i32, i32, i32
  }
}

</mosaic_0001>

<bundles_post_ra>
// kernel: tpu_custom_call.1
= control target key start
LH: loop header
LB: loop body
LE: loop exit
PB: predicated region body
PF: predicated region fallthrough
CT: control target
= control target key end

     0   :  { %7 = vsyncpa [#allocation3], 0  ;;  %s1162_s0 = inlined_call_operand.hbm [shape: f32[64,128], index: 0, kind: input, shape index: {}]   ;;  %s1163_s1 = inlined_call_operand.hbm [shape: s8[64,128], index: 1, kind: input, shape index: {}]   ;;  %s1164_s2 = inlined_call_operand.hbm [shape: f32[2,8,8,128], index: 2, kind: output, shape index: {}]  }
   0x1   :  { %9 = vsyncpa [#allocation3 + $0x1], 0 }
   0x2   :  { %10 = vsyncpa [#allocation6], 0 }
   0x3   :  { %12 = vsyncpa [#allocation6 + $0x1], 0 }
   0x4   :  { %13 = vsyncpa [#allocation4], 0 }
   0x5   :  { %15 = vsyncpa [#allocation4 + $0x1], 0  ;;  %s817_s9 = smov 0   ;;  %s819_s10 = smov 0  }
   0x6   :  { %s821_s11 = smov 0   ;;  %s823_s12 = smov 0  }
   0x7   :  { %s825_s13 = smov 0   ;;  %s827_s14 = smov 0  }
   0x8 LB: > { %s524_s15 = sadd.s32 4294967295, %s792_s14   ;;  %s525_s16 = sadd.s32 4294967294, %s792_s14   ;;  %s792_s14 = sphi %s827_s14, %s21_s14   ;;  %s788_s13 = sphi %s825_s13, %s1195_s13   ;;  %s784_s12 = sphi %s823_s12, %s1194_s12   ;;  %s780_s11 = sphi %s821_s11, %s1193_s11   ;;  %s776_s10 = sphi %s819_s10, %s1192_s10   ;;  %s772_s9 = sphi %s817_s9, %s1191_s9  }
   0x9   : > { %s33_s17 = sadd.s32 1, %s788_s13  ;;  %s42_s18 = sadd.s32 1, %s780_s11 }
   0xa   : > { %p35_p0 = scmp.ge.s32.totalorder %s33_s17, 2  ;;  %p49_p1 = scmp.ne.s32.totalorder %s780_s11, %s776_s10 }
   0xb   : > { %p50_p2 = scmp.eq.s32.totalorder %s792_s14, 0  ;;  %p55_p3 = scmp.ne.s32.totalorder %s776_s10, %s772_s9 }
   0xc   : > { %s1197_s17 = smov (%p35_p0, %s33_s17), 0  ;;  %p56_p5 = scmp.eq.s32.totalorder %s524_s15, 0 }
   0xd   : > { %p858_p4 = por %p50_p2, %p49_p1  ;;  %s39_s20 = ssub.s32 %s788_s13, %s1197_s17 }
   0xe   : > { %p107_p6 = scmp.eq.s32.totalorder %s524_s15, 1  ;;  %p40_p7 = scmp.eq.s32.totalorder %s39_s20, 0 }
   0xf   : > { %p864_p8 = por %p56_p5, %p55_p3  ;;  %p113_p10 = scmp.eq.s32.totalorder %s525_s16, 1 }
  0x10   : > { %p868_p9 = por %p107_p6, %p49_p1  ;;  %p575_p13 = scmp.lt.s32.totalorder %s792_s14, 2 }
  0x11   : > { %s1172_s21 = scalar_select %p864_p8, 1, 0 }
  0x12   : > { %s1173_s22 = scalar_select %p868_p9, 1, 0 }
  0x13   : > { %s873_s23 = scalar_select %p40_p7, %s780_s11, %s42_s18  }
  0x14   : > { %p875_p11 = por %p113_p10, %p55_p3  ;;  %s882_s25 = sand.u32 1, %s780_s11  }
  0x15   : > { %s528_s26 = sshll.u32 %s882_s25, 5  ;;  %s556_s27 = sshll.u32 %s788_s13, 9 }
  0x16   : > { %s1174_s24 = scalar_select %p875_p11, 1, 0 }
  0x17   : > { %s889_s30 = scalar_lea.hbm %s1162_s0, %s556_s27  ;;  %s137_s3 = scalar_lea.vmem [#allocation2], %s528_s26 }
  0x18   : > { %s145_s4 = sshll.u32 %s137_s3, 4  ;;  %p895_p0 = pnand %p575_p13, %p858_p4  ;;  %s891_s4 = int_to_ptr.vmem [resolvable:$true] %s145_s4 }
  0x19   : > { %s134_s6 = scalar_lea.sflag [#allocation3], %s882_s25  ;;  %s646_s7 = scalar_lea.hbm %s889_s30, 512 }
  0x1a   : > { %p647_p2 = scmp.ne.s32.totalorder %s889_s30, %s646_s7  ;;  %p648_p3 = pneg %p895_p0 }
  0x1b   : > { %s651_s16 = scalar_lea.hbm %s1162_s0, 1024  ;;  %p652_p4 = scmp.lt.u32.totalorder %s889_s30, %s1162_s0 }
  0x1c   : > { %p649_p5 = pnand %p648_p3, %p647_p2  ;;  %p653_p7 = scmp.lt.u32.totalorder %s651_s16, %s646_s7 }
  0x1d   : > { %p655_p13 = scmp.lt.u32.totalorder %s646_s7, %s889_s30 }
  0x1e   : > { %p650_p6 = pneg %p649_p5  ;;  %p654_p10 = por %p653_p7, %p652_p4 }
  0x20   : > { %p656_p12 = por %p655_p13, %p654_p10 }
  0x22   : > { %p657_p1 = pnand %p656_p12, %p650_p6 }
  0x24   : > { %660 = shalt.err (!%p657_p1)
}
  0x25   : > { %s661_s20 = scalar_lea.vmem %s891_s4, 512  ;;  %s794_s26 = smov [#allocation2]  }
  0x26   : > { %p662_p2 = scmp.ne.s32.totalorder %s891_s4, %s661_s20  ;;  %s666_s27 = sshll.u32 %s794_s26, 4  ;;  %s667_s27 = int_to_ptr.vmem [resolvable:$false] %s666_s27 }
  0x27   : > { %s668_s28 = scalar_lea.vmem %s667_s27, 1024  ;;  %p669_p9 = scmp.lt.s32.totalorder %s891_s4, %s667_s27 }
  0x28   : > { %p664_p5 = pnand %p662_p2, %p648_p3  ;;  %p670_p4 = scmp.lt.s32.totalorder %s668_s28, %s661_s20 }
  0x2a   : > { %p665_p11 = pneg %p664_p5  ;;  %p671_p7 = por %p670_p4, %p669_p9 }
  0x2c   : > { %p672_p10 = pnand %p671_p7, %p665_p11 }
  0x2e   : > { %675 = shalt.err (!%p672_p10)
}
  0x2f   : > { %s795_s29 = smov 128   ;;  %s796_s3 = smov 8  }
  0x30   : > { %567 = dma.hbm_to_vmem [thread:$0]  (!%p895_p0), %s889_s30, 512, %s891_s4, %s134_s6, %s795_s29, %s795_s29, %s796_s3  }
  0x31   : > { %p172_p12 = scmp.lt.s32.totalorder %s792_s14, 3  ;;  %s531_s7 = sshll.u32 %s882_s25, 3 }
  0x32   : > { %s532_s8 = sshll.u32 %s788_s13, 7  ;;  %p1176_p9 = scmp.ge.s32.totalorder %s792_s14, 1 }
  0x33   : > { %s940_s19 = scalar_lea.hbm %s1163_s1, %s532_s8  ;;  %s159_s20 = scalar_lea.vmem [#allocation5], %s531_s7 }
  0x34   : > { %p933_p11 = pnand %p1176_p9, %p172_p12  ;;  %s167_s26 = sshll.u32 %s159_s20, 4  ;;  %s168_s26 = int_to_ptr.vmem [resolvable:$true] %s167_s26 }
  0x35   : > { %s156_s30 = scalar_lea.sflag [#allocation6], %s882_s25  ;;  %s676_s4 = scalar_lea.hbm %s940_s19, 128 }
  0x36   : > { %s1177_s15 = scalar_select %p933_p11, 1, 0 }
  0x37   : > { %p677_p1 = scmp.ne.s32.totalorder %s940_s19, %s676_s4  ;;  %s681_s28 = scalar_lea.hbm %s1163_s1, 256 }
  0x38   : > { %p682_p2 = scmp.lt.u32.totalorder %s940_s19, %s1163_s1  ;;  %p683_p5 = scmp.lt.u32.totalorder %s681_s28, %s676_s4 }
  0x39   : > { %p679_p6 = pnand %p677_p1, %p648_p3  ;;  %p685_p7 = scmp.lt.u32.totalorder %s676_s4, %s940_s19 }
  0x3a   : > { %p684_p4 = por %p683_p5, %p682_p2 }
  0x3b   : > { %p680_p13 = pneg %p679_p6 }
  0x3c   : > { %p686_p10 = por %p685_p7, %p684_p4 }
  0x3e   : > { %p687_p12 = pnand %p686_p10, %p680_p13 }
  0x40   : > { %690 = shalt.err (!%p687_p12)
}
  0x41   : > { %s691_s25 = scalar_lea.vmem %s168_s26, 128  ;;  %s797_s7 = smov [#allocation5]  }
  0x42   : > { %p692_p9 = scmp.ne.s32.totalorder %s168_s26, %s691_s25  ;;  %s696_s8 = sshll.u32 %s797_s7, 4  ;;  %s697_s8 = int_to_ptr.vmem [resolvable:$false] %s696_s8 }
  0x43   : > { %s698_s16 = scalar_lea.vmem %s697_s8, 256  ;;  %p699_p8 = scmp.lt.s32.totalorder %s168_s26, %s697_s8 }
  0x44   : > { %p694_p1 = pnand %p692_p9, %p648_p3  ;;  %p700_p11 = scmp.lt.s32.totalorder %s698_s16, %s691_s25 }
  0x46   : > { %p695_p6 = pneg %p694_p1  ;;  %p701_p2 = por %p700_p11, %p699_p8 }
  0x48   : > { %p702_p5 = pnand %p701_p2, %p695_p6 }
  0x4a   : > { %705 = shalt.err (!%p702_p5)
}
  0x4b   : > { %570 = dma.hbm_to_vmem [thread:$0]  (!%p895_p0), %s940_s19, 128, %s168_s26, %s156_s30  }
  0x4c   : > { %p1178_p13 = scmp.ne.s32.totalorder %s1177_s15, 0 }
  0x4d   : > { %s965_s18 = sand.u32 (!%p1178_p13), 1, %s776_s10   ;;  %p1179_p3 = scmp.ne.s32.totalorder (!%p1178_p13), %s1172_s21, 0 }
  0x4e   : > { %176 = sbr.rel (%p1178_p13) target bundleno = 154 (0x9a), region = 28  ;;  %s534_s20 = sshll.u32 (!%p1178_p13), %s965_s18, 5 }
  0x4f   : > { %s179_s4 = scalar_lea.sflag (!%p1178_p13), [#allocation3], %s965_s18  ;;  %s182_s6 = scalar_lea.vmem (!%p1178_p13), [#allocation2], %s534_s20 }
  0x55   : > { %759 = dma.done.wait (%p1179_p3), %s179_s4, 512  }
  0x56   : > { %761 = vsyncadd (%p1179_p3), %s179_s4, 4294966784  ;;  %s535_s5 = sshll.u32 %s965_s18, 3  ;;  %s188_s15 = scalar_lea.sflag [#allocation6], %s965_s18 }
  0x57   : > { %s191_s19 = scalar_lea.vmem [#allocation5], %s535_s5 }
  0x58   : > { %763 = dma.done.wait (%p1179_p3), %s188_s15, 128  }
  0x59   : > { %765 = vsyncadd (%p1179_p3), %s188_s15, 4294967168  ;;  %v979_v0 = vld [vmem:[%s182_s6] sm:$0xff]  ;;  %v981_v1 = vld [vmem:[%s182_s6 + $0x8] sm:$0xff]  ;;  %v798_v17 = vmov 0.0   ;;  %s536_s21 = sshll.u32 %s965_s18, 6  ;;  %s557_s30 = sshll.u32 %s784_s12, 10 }
  0x5a   : > { %v983_v2 = vld [vmem:[%s182_s6 + $0x10] sm:$0xff]  ;;  %v985_v3 = vld [vmem:[%s182_s6 + $0x18] sm:$0xff]  ;;  %v236_v4 = vld [vmem:[%s191_s19] sm:$0xff]  ;;  %v245_v9 = vand.u32 2147483647, %v979_v0  ;;  %s1036_s26 = scalar_lea.vmem [#allocation7], %s536_s21  ;;  %s1110_s3 = scalar_lea.hbm %s1164_s2, %s557_s30 }
  0x5b   : > { %v987_v5 = vunpack.c.0.s8 %v236_v4  ;;  %v989_v6 = vunpack.c.1.s8 %v236_v4  ;;  %v991_v7 = vunpack.c.2.s8 %v236_v4  ;;  %v993_v8 = vunpack.c.3.s8 %v236_v4  ;;  %s418_s27 = sshll.u32 %s1036_s26, 4  ;;  %s405_s25 = scalar_lea.sflag [#allocation4], %s965_s18  ;;  %s1112_s27 = int_to_ptr.vmem [resolvable:$true] %s418_s27 }
  0x5c   : > { %v246_v10 = vand.u32 2147483647, %v981_v1  ;;  %v247_v11 = vand.u32 2147483647, %v983_v2  ;;  %v248_v12 = vand.u32 2147483647, %v985_v3 }
  0x5d   : > { %vm301_vm0 = vcmp.eq.s32.totalorder %v987_v5, 0  ;;  %vm302_vm1 = vcmp.eq.s32.totalorder %v989_v6, 0  ;;  %v249_v13 = vsub.f32 0.0, %v245_v9  ;;  %vm303_vm2 = vcmp.eq.s32.totalorder %v991_v7, 0  ;;  %s706_s7 = scalar_lea.vmem %s1112_s27, 1024  ;;  %p1188_p0 = scmp.ne.s32.totalorder %s1173_s22, 0 }
  0x5e   : > { %v250_v14 = vsub.f32 0.0, %v246_v10  ;;  %vm304_vm3 = vcmp.eq.s32.totalorder %v993_v8, 0  ;;  %v251_v15 = vsub.f32 0.0, %v247_v11  ;;  %v252_v16 = vsub.f32 0.0, %v248_v12  ;;  %p707_p8 = scmp.ne.s32.totalorder %s1112_s27, %s706_s7  ;;  %s799_s12 = smov [#allocation7]  }
  0x5f   : > { %v312_v18 = vsel %vm301_vm0, 1.0, %v798_v17  ;;  %v313_v19 = vsel %vm302_vm1, 1.0, %v798_v17  ;;  %v253_v20 = vmul.f32 1.442695, %v249_v13  ;;  %v314_v22 = vsel %vm303_vm2, 1.0, %v798_v17  ;;  %s710_s8 = sshll.u32 %s799_s12, 4  ;;  %s711_s8 = int_to_ptr.vmem [resolvable:$false] %s710_s8 }
  0x60   : > { %v255_v21 = vmul.f32 1.442695, %v250_v14  ;;  %v315_v23 = vsel %vm304_vm3, 1.0, %v798_v17  ;;  %v257_v24 = vmul.f32 1.442695, %v251_v15  ;;  %v316_v26 = vadd.f32 %v313_v19, %v312_v18  ;;  %p708_p11 = pnand %p707_p8, %p1188_p0  ;;  %s712_s16 = scalar_lea.vmem %s711_s8, 2048 }
  0x61   : > { %v259_v25 = vmul.f32 1.442695, %v252_v16  ;;  %vm326_vm4 = vcmp.eq.s32.totalorder %v987_v5, 1  ;;  %630 = vpow2.f32 %v253_v20  ;;  %vm327_vm5 = vcmp.eq.s32.totalorder %v989_v6, 1  ;;  %p713_p7 = scmp.lt.s32.totalorder %s1112_s27, %s711_s8  ;;  %p714_p10 = scmp.lt.s32.totalorder %s712_s16, %s706_s7 }
  0x62   : > { %vm328_vm6 = vcmp.eq.s32.totalorder %v991_v7, 1  ;;  %vm329_vm7 = vcmp.eq.s32.totalorder %v993_v8, 1  ;;  %632 = vpow2.f32 %v255_v21  ;;  %v317_v27 = vadd.f32 %v316_v26, %v314_v22  ;;  %p709_p4 = pneg %p708_p11 }
  0x63   : > { %v337_v28 = vsel %vm326_vm4, 1.0, %v798_v17  ;;  %v338_v29 = vsel %vm327_vm5, 1.0, %v798_v17  ;;  %634 = vpow2.f32 %v257_v24  ;;  %v339_v30 = vsel %vm328_vm6, 1.0, %v798_v17  ;;  %p715_p12 = por %p714_p10, %p713_p7 }
  0x64   : > { %v340_v31 = vsel %vm329_vm7, 1.0, %v798_v17  ;;  %v341_v32 = vadd.f32 %v338_v29, %v337_v28  ;;  %636 = vpow2.f32 %v259_v25  ;;  %v318_v33 = vadd.f32 %v317_v27, %v315_v23 }
  0x65   : > { %vm352_vm8 = vcmp.eq.s32.totalorder %v987_v5, 2  ;;  %vm353_vm9 = vcmp.eq.s32.totalorder %v989_v6, 2  ;;  %vm354_vm10 = vcmp.eq.s32.totalorder %v991_v7, 2  ;;  %vm1170_vm11 = vcmp.eq.s32.totalorder %v993_v8, 2  ;;  %p716_p9 = pnand %p715_p12, %p709_p4 }
  0x66   : > { %v342_v34 = vadd.f32 %v341_v32, %v339_v30  ;;  %v363_v35 = vsel %vm352_vm8, 1.0, %v798_v17  ;;  %v364_v36 = vsel %vm353_vm9, 1.0, %v798_v17  ;;  %v365_v37 = vsel %vm354_vm10, 1.0, %v798_v17  ;;  %538 = vst [vmem:[%s1036_s26 + $0x20] sm:$0xff] %v318_v33 }
  0x67   : > { %v367_v39 = vadd.f32 %v364_v36, %v363_v35  ;;  %vm378_vm12 = vcmp.eq.s32.totalorder %v987_v5, 3  ;;  %vm1169_vm13 = vcmp.eq.s32.totalorder %v989_v6, 3  ;;  %v366_v40 = vsel %vm1170_vm11, 1.0, %v798_v17 }
  0x68   : > { %v343_v38 = vadd.f32 %v342_v34, %v340_v31  ;;  %vm1168_vm14 = vcmp.eq.s32.totalorder %v991_v7, 3  ;;  %v389_v41 = vsel %vm378_vm12, 1.0, %v798_v17  ;;  %v390_v42 = vsel %vm1169_vm13, 1.0, %v798_v17 }
  0x69   : > { %v368_v43 = vadd.f32 %v367_v39, %v365_v37  ;;  %v393_v44 = vadd.f32 %v390_v42, %v389_v41  ;;  %v391_v47 = vsel %vm1168_vm14, 1.0, %v798_v17  ;;  %vm1167_vm15 = vcmp.eq.s32.totalorder %v993_v8, 3 }
  0x6a   : > { %542 = vst [vmem:[%s1036_s26 + $0x28] sm:$0xff] %v343_v38  ;;  %v392_v56 = vsel %vm1167_vm15, 1.0, %v798_v17  ;;  %v241_v15 = vmin.f32 %v979_v0, 0.0  ;;  %v242_v20 = vmin.f32 %v981_v1, 0.0  ;;  %v243_v25 = vmin.f32 %v983_v2, 0.0 }
  0x6b   : > { %v631_v45 = vpop.eup %630  ;;  %v369_v46 = vadd.f32 %v368_v43, %v366_v40  ;;  %v394_v54 = vadd.f32 %v393_v44, %v391_v47  ;;  %v244_v30 = vmin.f32 %v985_v3, 0.0 }
  0x6c   : > { %v633_v48 = vpop.eup %632  ;;  %v261_v49 = vadd.f32 1.0, %v631_v45  ;;  %v264_v55 = vmul.f32 -0.5, %v631_v45  ;;  %v267_v63 = vand.u32 2147483647, %v631_v45 }
  0x6d   : > { %v635_v50 = vpop.eup %634  ;;  %v270_v51 = vadd.f32 1.0, %v633_v48  ;;  %546 = vst [vmem:[%s1036_s26 + $0x30] sm:$0xff] %v369_v46  ;;  %v273_v57 = vmul.f32 -0.5, %v633_v48  ;;  %v395_v60 = vadd.f32 %v394_v54, %v392_v56  ;;  %v276_v9 = vand.u32 2147483647, %v633_v48 }
  0x6e   : > { %v637_v52 = vpop.eup %636  ;;  %638 = vlog2.f32 %v261_v49  ;;  %v279_v53 = vadd.f32 1.0, %v635_v50  ;;  %v282_v59 = vmul.f32 -0.5, %v635_v50  ;;  %v265_v61 = vadd.f32 1.0, %v264_v55 }
  0x6f   : > { %640 = vlog2.f32 %v270_v51  ;;  %v288_v58 = vadd.f32 1.0, %v637_v52  ;;  %v291_v62 = vmul.f32 -0.5, %v637_v52  ;;  %v274_v4 = vadd.f32 1.0, %v273_v57  ;;  %550 = vst [vmem:[%s1036_s26 + $0x38] sm:$0xff] %v395_v60 }
  0x70   : > { %642 = vlog2.f32 %v279_v53  ;;  %v283_v10 = vadd.f32 1.0, %v282_v59  ;;  %v285_v11 = vand.u32 2147483647, %v635_v50  ;;  %v266_v12 = vmul.f32 %v631_v45, %v265_v61 }
  0x71   : > { %644 = vlog2.f32 %v288_v58  ;;  %v292_v13 = vadd.f32 1.0, %v291_v62  ;;  %vm1055_vm15 = vcmp.lt.f32.partialorder %v267_v63, 0.0004427343  ;;  %v275_v17 = vmul.f32 %v633_v48, %v274_v4 }
  0x72   : > { %v294_v18 = vand.u32 2147483647, %v637_v52  ;;  %vm1060_vm14 = vcmp.lt.f32.partialorder %v276_v9, 0.0004427343  ;;  %v284_v23 = vmul.f32 %v635_v50, %v283_v10  ;;  %vm286_vm13 = vcmp.lt.f32.partialorder %v285_v11, 0.0004427343 }
  0x73   : > { %v293_v28 = vmul.f32 %v637_v52, %v292_v13 }
  0x74   : > { %vm295_vm11 = vcmp.lt.f32.partialorder %v294_v18, 0.0004427343 }
  0x78   : > { %v639_v14 = vpop.eup %638 }
  0x79   : > { %v641_v19 = vpop.eup %640  ;;  %v263_v21 = vmul.f32 0.6931472, %v639_v14 }
  0x7a   : > { %v643_v24 = vpop.eup %642  ;;  %v272_v26 = vmul.f32 0.6931472, %v641_v19 }
  0x7b   : > { %v269_v0 = vsel %vm1055_vm15, %v266_v12, %v263_v21  ;;  %v281_v27 = vmul.f32 0.6931472, %v643_v24  ;;  %v645_v29 = vpop.eup %644 }
  0x7c   : > { %v278_v1 = vsel %vm1060_vm14, %v275_v17, %v272_v26  ;;  %v297_v31 = vsub.f32 %v241_v15, %v269_v0  ;;  %v290_v33 = vmul.f32 0.6931472, %v645_v29 }
  0x7d   : > { %v287_v32 = vsel %vm286_vm13, %v284_v23, %v281_v27  ;;  %v298_v34 = vsub.f32 %v242_v20, %v278_v1 }
  0x7e   : > { %v299_v35 = vsub.f32 %v243_v25, %v287_v32  ;;  %v305_v2 = vsel %vm301_vm0, %v297_v31, 0.0  ;;  %v330_v36 = vsel %vm326_vm4, %v297_v31, 0.0  ;;  %v356_v37 = vsel %vm352_vm8, %v297_v31, 0.0 }
  0x7f   : > { %v296_v38 = vsel %vm295_vm11, %v293_v28, %v290_v33  ;;  %v306_v3 = vsel %vm302_vm1, %v298_v34, 0.0  ;;  %v331_v39 = vsel %vm327_vm5, %v298_v34, 0.0  ;;  %v357_v40 = vsel %vm353_vm9, %v298_v34, 0.0 }
  0x80   : > { %v300_v41 = vsub.f32 %v244_v30, %v296_v38  ;;  %v307_v42 = vsel %vm303_vm2, %v299_v35, 0.0  ;;  %v309_v43 = vadd.f32 %v306_v3, %v305_v2  ;;  %v332_v44 = vsel %vm328_vm6, %v299_v35, 0.0 }
  0x81   : > { %v334_v45 = vadd.f32 %v331_v39, %v330_v36  ;;  %v358_v46 = vsel %vm354_vm10, %v299_v35, 0.0  ;;  %v360_v47 = vadd.f32 %v357_v40, %v356_v37  ;;  %v382_v48 = vsel %vm378_vm12, %v297_v31, 0.0 }
  0x82   : > { %v308_v49 = vsel %vm304_vm3, %v300_v41, 0.0  ;;  %v310_v50 = vadd.f32 %v309_v43, %v307_v42  ;;  %v333_v51 = vsel %vm329_vm7, %v300_v41, 0.0  ;;  %vm1184_vm0 = vcmp.eq.s32.totalorder %v993_v8, 2 }
  0x83   : > { %v359_v52 = vsel %vm1184_vm0, %v300_v41, 0.0  ;;  %v335_v53 = vadd.f32 %v334_v45, %v332_v44  ;;  %v361_v54 = vadd.f32 %v360_v47, %v358_v46  ;;  %vm1185_vm1 = vcmp.eq.s32.totalorder %v989_v6, 3 }
  0x84   : > { %v383_v5 = vsel %vm1185_vm1, %v298_v34, 0.0  ;;  %vm1186_vm2 = vcmp.eq.s32.totalorder %v991_v7, 3  ;;  %v311_v56 = vadd.f32 %v310_v50, %v308_v49  ;;  %vm1187_vm3 = vcmp.eq.s32.totalorder %v993_v8, 3 }
  0x85   : > { %v384_v55 = vsel %vm1186_vm2, %v299_v35, 0.0  ;;  %v386_v57 = vadd.f32 %v383_v5, %v382_v48  ;;  %v336_v58 = vadd.f32 %v335_v53, %v333_v51  ;;  %v362_v59 = vadd.f32 %v361_v54, %v359_v52 }
  0x86   : > { %v385_v60 = vsel %vm1187_vm3, %v300_v41, 0.0  ;;  %321 = vst [vmem:[%s1036_s26] sm:$0xff] %v311_v56 }
  0x87   : > { %v387_v61 = vadd.f32 %v386_v57, %v384_v55  ;;  %540 = vst [vmem:[%s1036_s26 + $0x8] sm:$0xff] %v336_v58  ;;  %544 = vst [vmem:[%s1036_s26 + $0x10] sm:$0xff] %v362_v59 }
  0x89   : > { %v388_v62 = vadd.f32 %v387_v61, %v385_v60 }
  0x8b   : > { %548 = vst [vmem:[%s1036_s26 + $0x18] sm:$0xff] %v388_v62 }
  0x8c   : > { %719 = shalt.err (!%p716_p9)
}
  0x8d   : > { %s720_s20 = scalar_lea.hbm %s1110_s3, 1024  ;;  %s724_s5 = scalar_lea.hbm %s1164_s2, 2048 }
  0x8e   : > { %p721_p1 = scmp.ne.s32.totalorder %s1110_s3, %s720_s20  ;;  %p725_p5 = scmp.lt.u32.totalorder %s1110_s3, %s1164_s2 }
  0x8f   : > { %p726_p13 = scmp.lt.u32.totalorder %s724_s5, %s720_s20  ;;  %p728_p8 = scmp.lt.u32.totalorder %s720_s20, %s1110_s3 }
  0x90   : > { %p722_p6 = pnand %p721_p1, %p1188_p0 }
  0x91   : > { %p727_p3 = por %p726_p13, %p725_p5 }
  0x92   : > { %p723_p2 = pneg %p722_p6 }
  0x93   : > { %p729_p11 = por %p728_p8, %p727_p3 }
  0x95   : > { %p730_p4 = pnand %p729_p11, %p723_p2 }
  0x97   : > { %733 = shalt.err (!%p730_p4)
}
  0x98   : > { %s800_s21 = smov 128   ;;  %s801_s26 = smov 8  }
  0x99   : > { %562 = dma.vmem_to_hbm [thread:$0]  (%p1188_p0), %s1112_s27, 1024, %s1110_s3, %s405_s25, %s800_s21, %s800_s21, %s801_s26  }
  0x9a PF: > { %s433_s30 = sand.u32 1, %s772_s9   ;;  %p1189_p7 = scmp.ne.s32.totalorder %s1174_s24, 0 }
  0x9b   : > { %p1190_p10 = scmp.ge.s32.totalorder %s792_s14, 2  ;;  %s434_s28 = scalar_lea.sflag [#allocation4], %s433_s30 }
  0x9d   : > { %p572_p12 = pnand %p1190_p10, %p1189_p7 }
  0x9f   : > { %767 = dma.done.wait (!%p572_p12), %s434_s28, 1024  }
  0xa0   : > { %769 = vsyncadd (!%p572_p12), %s434_s28, 4294966272  ;;  %s21_s14 = sadd.s32 1, %s792_s14   ;;  %s1191_s9 = smov %s776_s10 }
  0xa1   : > { %p18_p9 = scmp.ge.s32.totalorder %s21_s14, 4   ;;  %s1192_s10 = smov %s780_s11 }
  0xa2   : > { %s1193_s11 = smov %s873_s23  ;;  %s1194_s12 = smov %s788_s13 }
  0xa3   : > { %s1195_s13 = smov %s1197_s17  ;;  %20 = sbr.rel (!%p18_p9) target bundleno = 8 (0x8), region = 97 }
  0xaa   :  { %439 = vsyncpa [#allocation3], 1 }
  0xab   :  { %441 = vsyncpa [#allocation3 + $0x1], 1 }
  0xac   :  { %442 = vsyncpa [#allocation6], 1 }
  0xad   :  { %444 = vsyncpa [#allocation6 + $0x1], 1 }
  0xae   :  { %445 = vsyncpa [#allocation4], 1 }
  0xaf   :  { %447 = vsyncpa [#allocation4 + $0x1], 1 }

</bundles_post_ra>
